<compile_context>
chip_gen: v7x
topology: tpu7x:2x2x1
jax: 0.10.0
libtpu: 0.0.40
codegen_flags: <defaults>
</compile_context>

<pallas_src>
import functools

import jax
import jax.numpy as jnp
from jax import lax
from jax.experimental import pallas as pl
from jax.experimental.pallas import tpu as pltpu

EPS = 1e-12


def _round_up(x, m):
    return (x + m - 1) // m * m


# ---------------------------------------------------------------------------
# Kernel 1: spectral-norm power iteration on the flattened weight.
#   w_ref : (H, W)  flattened weight (H = Cout, W = Cin*KH*KW), f32
#   u_ref : (1, H)  left singular-vector estimate, f32
#   v_ref : (1, W)  right singular-vector estimate, f32
# outputs:
#   u_out_ref   : (1, H) updated u (f32)
#   v_out_ref   : (1, W) updated v (f32)
#   inv_sig_ref : (1, 1) 1/sigma (f32) -- consumed by the conv kernel; the
#                 scaled weight is never materialized in HBM.
# ---------------------------------------------------------------------------
def _spectral_norm_kernel(w_ref, u_ref, v_ref, u_out_ref, v_out_ref,
                          inv_sig_ref, *, power_iterations):
    w = w_ref[...]            # (H, W)
    u = u_ref[...]            # (1, H)
    v = v_ref[...]            # (1, W)
    for _ in range(power_iterations):
        # v = l2normalize(W^T u)  -- as a row vector: u @ W
        wv = jnp.dot(u, w, preferred_element_type=jnp.float32)        # (1, W)
        v = wv * (1.0 / (jnp.sqrt(jnp.sum(wv * wv)) + EPS))
        # u = l2normalize(W v)    -- contract over w's 2nd axis, no w.T copy
        wu = lax.dot_general(v, w,
                             dimension_numbers=(((1,), (1,)), ((), ())),
                             preferred_element_type=jnp.float32)      # (1, H)
        u = wu * (1.0 / (jnp.sqrt(jnp.sum(wu * wu)) + EPS))
    # sigma = u . (W v)   (recomputed from final u, v; also correct when
    # power_iterations == 0 with the stored u, v)
    wv_h = lax.dot_general(v, w,
                           dimension_numbers=(((1,), (1,)), ((), ())),
                           preferred_element_type=jnp.float32)        # (1, H)
    sigma = jnp.sum(u * wv_h, axis=1, keepdims=True)                  # (1, 1)
    u_out_ref[...] = u
    v_out_ref[...] = v
    inv_sig_ref[...] = 1.0 / sigma      # matches PyTorch w/sigma (no eps guard)


# ---------------------------------------------------------------------------
# Kernel 2: conv-as-matmul, canonical (Cout,K)@(K,TM) contraction.
#   inv_sig_ref : (1,)        1/sigma scalar (SMEM, resident)
#   p_ref       : (1, K, TM)  patch tile (compute dtype), lane axis = TM
#   w_ref       : (Cout, K)   unscaled weight (compute dtype, resident)
#   b_ref       : (Cout, 1)   bias (f32, resident)
#   o_ref       : (1, Cout, TM) output tile (out dtype), lane-dense along TM
# ---------------------------------------------------------------------------
def _conv_matmul_kernel(inv_sig_ref, p_ref, w_ref, b_ref, o_ref):
    inv_sigma = inv_sig_ref[0]                     # f32 scalar from SMEM
    p = p_ref[0]                                   # (K, TM)
    w = w_ref[...]                                 # (Cout, K)
    acc = jnp.dot(w, p, preferred_element_type=jnp.float32)   # (Cout, TM) f32
    o_ref[0] = (acc * inv_sigma + b_ref[...]).astype(o_ref.dtype)


def _im2col_nchw(x, kh, kw, pad):
    """Plain-JAX glue: build (N, Cin*KH*KW, H*W) patches (channel-major K,
    matching PyTorch's weight.view(Cout, -1) order) with NO transpose."""
    n, c, h, w = x.shape
    # stride-1 "same" geometry only (the SpectralNorm(Conv2d(k, padding)) case)
    assert kh == 2 * pad + 1 and kw == 2 * pad + 1, "stride-1 'same' conv only"
    xp = jnp.pad(x, ((0, 0), (0, 0), (pad, pad), (pad, pad)))
    cols = [xp[:, :, i:i + h, j:j + w] for i in range(kh) for j in range(kw)]
    stacked = jnp.stack(cols, axis=2)                 # (N, C, KH*KW, H, W)
    return stacked.reshape(n, c * kh * kw, h * w)     # (N, K, HW)


def _conv_vmem_bytes(tile_m, k, cout, in_bytes, out_bytes):
    """Rough live-VMEM estimate for the conv call (double-buffered tiles)."""
    sub_in = 32 // in_bytes        # sublane packing multiple for compute dtype
    sub_out = 32 // out_bytes
    patches = 2 * _round_up(k, sub_in) * tile_m * in_bytes
    out = 2 * _round_up(cout, sub_out) * tile_m * out_bytes
    wt = _round_up(cout, sub_in) * _round_up(k, 128) * in_bytes
    bias = _round_up(cout, 8) * 128 * 4
    return patches + out + wt + bias


def _pick_tile_m(hw_pad, k, cout, in_bytes, out_bytes,
                 target=512, vmem_budget=24 * 1024 * 1024):
    """Largest 128-multiple TM <= target dividing hw_pad within a VMEM budget
    that is safe on v7x (64 MiB physical); hw_pad is already a 128 multiple."""
    best = 128
    tm = 128
    limit = min(target, hw_pad)
    while tm <= limit:
        if hw_pad % tm == 0 and \
                _conv_vmem_bytes(tm, k, cout, in_bytes, out_bytes) <= vmem_budget:
            best = tm
        tm += 128
    return best


def spectral_norm_conv2d(x, weight, bias, u, v, *, power_iterations=1, padding=1,
                         tile_m=None, compute_dtype=jnp.bfloat16, out_dtype=None):
    """Forward of SpectralNorm(nn.Conv2d(Cin, Cout, K, padding)).

    Returns (y_nchw, u_new, v_new).  Pass compute_dtype=jnp.float32 (and
    out_dtype=jnp.float32) to recover ~1e-5 agreement with an f32 reference."""
    assert power_iterations >= 0
    n, cin, h, w = x.shape
    cout, cin_w, kh, kw = weight.shape
    assert cin == cin_w
    hdim, wdim = cout, cin * kh * kw
    out_dtype = compute_dtype if out_dtype is None else out_dtype

    w_mat = weight.reshape(hdim, wdim).astype(jnp.float32)
    u2 = u.reshape(1, hdim).astype(jnp.float32)
    v2 = v.reshape(1, wdim).astype(jnp.float32)

    # ---- spectral normalization kernel (whole weight, single invocation) ----
    u_new, v_new, inv_sigma = pl.pallas_call(
        functools.partial(_spectral_norm_kernel, power_iterations=power_iterations),
        out_shape=(
            jax.ShapeDtypeStruct((1, hdim), jnp.float32),
            jax.ShapeDtypeStruct((1, wdim), jnp.float32),
            jax.ShapeDtypeStruct((1, 1), jnp.float32),
        ),
        in_specs=[
            pl.BlockSpec((hdim, wdim), lambda: (0, 0)),
            pl.BlockSpec((1, hdim), lambda: (0, 0)),
            pl.BlockSpec((1, wdim), lambda: (0, 0)),
        ],
        out_specs=(
            pl.BlockSpec((1, hdim), lambda: (0, 0)),
            pl.BlockSpec((1, wdim), lambda: (0, 0)),
            pl.BlockSpec((1, 1), lambda: (0, 0)),
        ),
    )(w_mat, u2, v2)

    # ---- conv forward: bf16 im2col in (N, K, HW) layout + tiled Pallas matmul
    patches = _im2col_nchw(x.astype(compute_dtype), kh, kw, padding)  # (N,K,HW)
    hw = h * w
    k = wdim
    hw_pad = _round_up(hw, 128)          # lane-dense output tiles, always
    if hw_pad != hw:
        patches = jnp.pad(patches, ((0, 0), (0, 0), (0, hw_pad - hw)))

    in_bytes = jnp.dtype(compute_dtype).itemsize
    out_bytes = jnp.dtype(out_dtype).itemsize
    if tile_m is None:
        tile_m = _pick_tile_m(hw_pad, k, cout, in_bytes, out_bytes)
    assert tile_m % 128 == 0 and hw_pad % tile_m == 0, \
        "tile_m must be a 128-multiple dividing the padded H*W"
    num_m = hw_pad // tile_m

    vmem_est = _conv_vmem_bytes(tile_m, k, cout, in_bytes, out_bytes)
    vmem_limit = int(min(max(32 * 1024 * 1024, 2 * vmem_est + 8 * 1024 * 1024),
                         48 * 1024 * 1024))

    w_conv = w_mat.astype(compute_dtype)              # (Cout, K), unscaled
    b2 = bias.reshape(cout, 1).astype(jnp.float32)    # broadcasts over lanes
    inv_sig = inv_sigma.reshape(1)                    # SMEM scalar

    out = pl.pallas_call(
        _conv_matmul_kernel,
        out_shape=jax.ShapeDtypeStruct((n, cout, hw_pad), out_dtype),
        grid=(n, num_m),
        in_specs=[
            pl.BlockSpec(memory_space=pltpu.MemorySpace.SMEM),      # 1/sigma
            pl.BlockSpec((1, k, tile_m), lambda b, m: (b, 0, m)),   # patches
            pl.BlockSpec((cout, k), lambda b, m: (0, 0)),           # weight resident
            pl.BlockSpec((cout, 1), lambda b, m: (0, 0)),           # bias resident
        ],
        out_specs=pl.BlockSpec((1, cout, tile_m), lambda b, m: (b, 0, m)),
        compiler_params=pltpu.CompilerParams(
            dimension_semantics=("parallel", "parallel"),
            vmem_limit_bytes=vmem_limit),
    )(inv_sig, patches, w_conv, b2)

    y = out[:, :, :hw].reshape(n, cout, h, w)   # drop HW pad; already NCHW order
    return y, u_new.reshape(hdim), v_new.reshape(wdim)


if __name__ == "__main__":
    key = jax.random.PRNGKey(0)
    k_w, k_b, k_u, k_v, k_x = jax.random.split(key, 5)

    # SpectralNorm(nn.Conv2d(4, 8, kernel_size=3, padding=1))
    N, Cin, H, W = 2, 4, 16, 16
    Cout, K = 8, 3

    weight = 0.1 * jax.random.normal(k_w, (Cout, Cin, K, K), jnp.float32)
    bias = 0.1 * jax.random.normal(k_b, (Cout,), jnp.float32)
    u0 = jax.random.normal(k_u, (Cout,), jnp.float32)
    v0 = jax.random.normal(k_v, (Cin * K * K,), jnp.float32)
    u0 = u0 / (jnp.linalg.norm(u0) + EPS)          # l2normalize, as in _make_params
    v0 = v0 / (jnp.linalg.norm(v0) + EPS)
    x = jax.random.normal(k_x, (N, Cin, H, W), jnp.float32)

    # tile_m=128 exercises a multi-tile grid (H*W = 256 -> grid (2, 2)).
    y, u_new, v_new = spectral_norm_conv2d(x, weight, bias, u0, v0,
                                           power_iterations=1, padding=1,
                                           tile_m=128)
    jax.block_until_ready((y, u_new, v_new))

    # Pure-JAX reference (full f32).  Tolerance is relaxed because the conv
    # matmul inputs and output are bf16 (compute_dtype default); pass
    # compute_dtype=out_dtype=jnp.float32 above for ~1e-5 agreement.
    w_mat = weight.reshape(Cout, -1)
    v_r = w_mat.T @ u0
    v_r = v_r / (jnp.linalg.norm(v_r) + EPS)
    u_r = w_mat @ v_r
    u_r = u_r / (jnp.linalg.norm(u_r) + EPS)
    sig = u_r @ (w_mat @ v_r)
    w_sn_ref = weight / sig
    y_ref = lax.conv_general_dilated(
        x, w_sn_ref, window_strides=(1, 1), padding=((1, 1), (1, 1)),
        dimension_numbers=("NCHW", "OIHW", "NCHW"),
        precision=lax.Precision.HIGHEST,
    ) + bias[None, :, None, None]

    assert y.shape == (N, Cout, H, W)
    assert y.dtype == jnp.bfloat16
    assert jnp.allclose(y.astype(jnp.float32), y_ref, atol=3e-2, rtol=3e-2), \
        "conv output mismatch"
    assert jnp.allclose(u_new, u_r, atol=1e-4), "u mismatch"
    assert jnp.allclose(v_new, v_r, atol=1e-4), "v mismatch"

    print("KERNEL_OK")
</pallas_src>

<mosaic_0001>
module attributes {stable_mosaic.version = 11 : i64} {
  func.func @_spectral_norm_kernel(%arg0: memref<8x36xf32, #tpu.memory_space<vmem>>, %arg1: memref<1x8xf32, #tpu.memory_space<vmem>>, %arg2: memref<1x36xf32, #tpu.memory_space<vmem>>, %arg3: memref<1x8xf32, #tpu.memory_space<vmem>>, %arg4: memref<1x36xf32, #tpu.memory_space<vmem>>, %arg5: memref<1x1xf32, #tpu.memory_space<vmem>>) attributes {dimension_semantics = [], scalar_prefetch = 0 : i64, scratch_operands = 0 : i64, tpu.core_type = #tpu.core_type<tc>} {
    %c0 = arith.constant 0 : index
    %c0_0 = arith.constant 0 : index
    %0 = vector.load %arg0[%c0, %c0_0] : memref<8x36xf32, #tpu.memory_space<vmem>>, vector<8x36xf32>
    %c0_1 = arith.constant 0 : index
    %c0_2 = arith.constant 0 : index
    %1 = vector.load %arg1[%c0_1, %c0_2] : memref<1x8xf32, #tpu.memory_space<vmem>>, vector<1x8xf32>
    %cst = arith.constant dense<0.000000e+00> : vector<1x36xf32>
    %2 = tpu.matmul %1, %0, %cst {dimension_numbers = #tpu.dot_dimension_numbers<[1], [0], [0], [1], [0, 0, 1, 1], [], []>} : vector<1x8xf32>, vector<8x36xf32>, vector<1x36xf32> -> vector<1x36xf32>
    %3 = arith.mulf %2, %2 : vector<1x36xf32>
    %4 = vector.shape_cast %3 : vector<1x36xf32> to vector<1x1x36xf32>
    %cst_3 = arith.constant dense<0.000000e+00> : vector<1xf32>
    %5 = vector.multi_reduction <add>, %4, %cst_3 [1, 2] : vector<1x1x36xf32> to vector<1xf32>
    %6 = vector.shape_cast %5 : vector<1xf32> to vector<1x1x1xf32>
    %7 = vector.extract %6[0, 0, 0] : f32 from vector<1x1x1xf32>
    %8 = math.sqrt %7 : f32
    %cst_4 = arith.constant 9.99999996E-13 : f32
    %9 = arith.addf %8, %cst_4 : f32
    %cst_5 = arith.constant 1.000000e+00 : f32
    %10 = arith.divf %cst_5, %9 : f32
    %11 = vector.broadcast %10 : f32 to vector<1x36xf32>
    %12 = arith.mulf %2, %11 : vector<1x36xf32>
    %cst_6 = arith.constant dense<0.000000e+00> : vector<1x8xf32>
    %13 = tpu.matmul %12, %0, %cst_6 {dimension_numbers = #tpu.dot_dimension_numbers<[1], [1], [0], [0], [0, 0, 1, 0], [], []>} : vector<1x36xf32>, vector<8x36xf32>, vector<1x8xf32> -> vector<1x8xf32>
    %14 = arith.mulf %13, %13 : vector<1x8xf32>
    %15 = vector.shape_cast %14 : vector<1x8xf32> to vector<1x1x8xf32>
    %cst_7 = arith.constant dense<0.000000e+00> : vector<1xf32>
    %16 = vector.multi_reduction <add>, %15, %cst_7 [1, 2] : vector<1x1x8xf32> to vector<1xf32>
    %17 = vector.shape_cast %16 : vector<1xf32> to vector<1x1x1xf32>
    %18 = vector.extract %17[0, 0, 0] : f32 from vector<1x1x1xf32>
    %19 = math.sqrt %18 : f32
    %cst_8 = arith.constant 9.99999996E-13 : f32
    %20 = arith.addf %19, %cst_8 : f32
    %cst_9 = arith.constant 1.000000e+00 : f32
    %21 = arith.divf %cst_9, %20 : f32
    %22 = vector.broadcast %21 : f32 to vector<1x8xf32>
    %23 = arith.mulf %13, %22 : vector<1x8xf32>
    %cst_10 = arith.constant dense<0.000000e+00> : vector<1x8xf32>
    %24 = tpu.matmul %12, %0, %cst_10 {dimension_numbers = #tpu.dot_dimension_numbers<[1], [1], [0], [0], [0, 0, 1, 0], [], []>} : vector<1x36xf32>, vector<8x36xf32>, vector<1x8xf32> -> vector<1x8xf32>
    %25 = arith.mulf %23, %24 : vector<1x8xf32>
    %cst_11 = arith.constant dense<0.000000e+00> : vector<1xf32>
    %26 = vector.multi_reduction <add>, %25, %cst_11 [1] : vector<1x8xf32> to vector<1xf32>
    %27 = vector.shape_cast %26 : vector<1xf32> to vector<1x1xf32>
    %c0_12 = arith.constant 0 : index
    %c0_13 = arith.constant 0 : index
    %28 = vector.load %arg3[%c0_12, %c0_13] : memref<1x8xf32, #tpu.memory_space<vmem>>, vector<1x8xf32>
    tpu.vector_store %arg3[%c0_12, %c0_13], %23 {strides = array<i32>} : memref<1x8xf32, #tpu.memory_space<vmem>>, vector<1x8xf32>,
    %c0_14 = arith.constant 0 : index
    %c0_15 = arith.constant 0 : index
    %29 = vector.load %arg4[%c0_14, %c0_15] : memref<1x36xf32, #tpu.memory_space<vmem>>, vector<1x36xf32>
    tpu.vector_store %arg4[%c0_14, %c0_15], %12 {strides = array<i32>} : memref<1x36xf32, #tpu.memory_space<vmem>>, vector<1x36xf32>,
    %cst_16 = arith.constant 1.000000e+00 : f32
    %30 = vector.broadcast %cst_16 : f32 to vector<1x1xf32>
    %31 = arith.divf %30, %27 : vector<1x1xf32>
    %c0_17 = arith.constant 0 : index
    %c0_18 = arith.constant 0 : index
    %32 = vector.load %arg5[%c0_17, %c0_18] : memref<1x1xf32, #tpu.memory_space<vmem>>, vector<1x1xf32>
    tpu.vector_store %arg5[%c0_17, %c0_18], %31 {strides = array<i32>} : memref<1x1xf32, #tpu.memory_space<vmem>>, vector<1x1xf32>,
    return
  }
}

</mosaic_0001>

<bundles_post_ra>
// kernel: tpu_custom_call.1
= control target key start
LH: loop header
LB: loop body
LE: loop exit
PB: predicated region body
PF: predicated region fallthrough
CT: control target
= control target key end

     0   :  { %11 = vsyncpa [#allocation3], 0  ;;  %s523_s0 = inlined_call_operand.hbm [shape: f32[8,36], index: 0, kind: input, shape index: {}]   ;;  %s524_s1 = inlined_call_operand.vmem [shape: f32[1,8], index: 1, kind: input, shape index: {}]   ;;  %s525_s2 = inlined_call_operand.vmem [shape: f32[1,36], index: 2, kind: input, shape index: {}]   ;;  %s526_s3 = inlined_call_operand.hbm [shape: f32[1,8], index: 3, kind: output, shape index: {0}]   ;;  %s527_s4 = inlined_call_operand.hbm [shape: f32[1,36], index: 4, kind: output, shape index: {1}]   ;;  %s528_s5 = inlined_call_operand.hbm [shape: f32[1,1], index: 5, kind: output, shape index: {2}]  }
   0x1   :  { %12 = vsyncpa [#allocation4], 0 }
   0x2   :  { %13 = vsyncpa [#allocation7], 0  ;;  %s429_s18 = smov [#allocation2]   ;;  %s335_s22 = scalar_lea.hbm %s523_s0, 128 }
   0x3   :  { %s20_s19 = sshll.u32 %s429_s18, 4  ;;  %p336_p0 = scmp.ne.s32.totalorder %s523_s0, %s335_s22  ;;  %s21_s19 = int_to_ptr.vmem [resolvable:$true] %s20_s19 }
   0x4   :  { %p339_p1 = scmp.lt.u32.totalorder %s335_s22, %s523_s0 }
   0x6   :  { %p341_p2 = pnand %p339_p1, %p336_p0 }
   0x8   :  { %344 = shalt.err (!%p341_p2)
}
   0x9   :  { %s345_s26 = scalar_lea.vmem %s21_s19, 128  ;;  %p350_p4 = scmp.lt.s32.totalorder %s21_s19, %s21_s19 }
   0xa   :  { %p346_p3 = scmp.ne.s32.totalorder %s21_s19, %s345_s26  ;;  %p351_p5 = scmp.lt.s32.totalorder %s345_s26, %s345_s26 }
   0xc   :  { %p352_p6 = por %p351_p5, %p350_p4 }
   0xe   :  { %p353_p7 = pnand %p352_p6, %p346_p3 }
  0x10   :  { %356 = shalt.err (!%p353_p7)
}
  0x11   :  { %23 = dma.hbm_to_vmem [thread:$0]  %s523_s0, 128, %s21_s19, [#allocation3]  }
  0x12   :  { %423 = dma.done.wait [#allocation3], 128  }
  0x13   :  { %424 = vsyncadd [#allocation3], 4294967168  ;;  %v430_v0 = vmov 0.0   ;;  %vm431_vm0 = vmmov 0   ;;  %vm33_vm1 = vcmask 64512   ;;  %v31_v1 = vld [vmem:[#allocation2] sm:$0xff] }
  0x14   :  { %297 = vmatprep.subr.mxu0 %v430_v0  ;;  %299 = vmatprep.mubr.msk.f32.mxu0 %vm431_vm0, %v430_v0  ;;  %v32_v2 = vld [vmem:[%s524_s1] sm:$0x1]  ;;  %vm108_vm2 = vcmask 286720   ;;  %vm134_vm3 = vcmask 293888   ;;  %vm212_vm6 = vcmask 57344   ;;  %s432_s12 = smov [#allocation6]  }
  0x15   :  { %302 = vmatprep.subr.mxu1 %v430_v0  ;;  %304 = vmatprep.mubr.msk.f32.mxu1 %vm431_vm0, %v430_v0  ;;  %s264_s13 = sshll.u32 %s432_s12, 4  ;;  %s433_s14 = smov [#allocation5]   ;;  %s265_s13 = int_to_ptr.vmem [resolvable:$true] %s264_s13 }
  0x16   :  { %298 = vmatpush3.msra.mxu0 %v31_v1  ;;  %303 = vmatpush3.xpose.msk.msra.mxu1 %vm134_vm3, %v31_v1  ;;  %s254_s15 = sshll.u32 %s433_s14, 4  ;;  %s357_s16 = scalar_lea.vmem %s265_s13, 16  ;;  %s255_s15 = int_to_ptr.vmem [resolvable:$true] %s254_s15 }
  0x17   :  { %300 = vmatmul.mubr.msk.f32.vlgmr.msra.gmra.mrb[0].mxu0 %vm33_vm1, %v32_v2  ;;  %p358_p8 = scmp.ne.s32.totalorder %s265_s13, %s357_s16  ;;  %s361_s17 = scalar_lea.vmem %s265_s13, 32 }
  0x18   :  { %p362_p9 = scmp.lt.s32.totalorder %s265_s13, %s265_s13  ;;  %p363_p10 = scmp.lt.s32.totalorder %s361_s17, %s357_s16 }
  0x1a   :  { %p364_p11 = por %p363_p10, %p362_p9 }
  0x1c   :  { %p365_p12 = pnand %p364_p11, %p358_p8 }
  0xea   :  { %v103_v3 = vpop.f32.mrb[0].mxu0 }
  0xeb   :  { %v301_v4 = vpop.f32.mrb[1].mxu0  ;;  %v107_v5 = vmul.f32 %v103_v3, %v103_v3 }
  0xed   :  { %v109_v6 = vsel %vm108_vm2, %v107_v5, 0.0 }
  0xee   :  { %110 = vadd.xlane.f32.xlu0 %v109_v6 }
 0x17b   :  { %v111_v7 = vpop.xlane.xlu0 %110 }
 0x17c   :  { %v112_v8 = vrot.slane %v111_v7, 4 }
 0x17e   :  { %v113_v9 = vadd.f32 %v112_v8, %v111_v7 }
 0x180   :  { %v114_v10 = vrot.slane %v113_v9, 2 }
 0x182   :  { %v115_v11 = vadd.f32 %v114_v10, %v113_v9 }
 0x184   :  { %v116_v12 = vrot.slane %v115_v11, 1 }
 0x186   :  { %v117_v13 = vadd.f32 %v116_v12, %v115_v11 }
 0x188   :  { %307 = vpush %v117_v13 }
 0x1b9   :  { %s308_s0 = spop %307 }
 0x1ba   :  { %v119_v14 = vstv %s308_s0 }
 0x1bb   :  { %325 = vrsqrt.f32 %v119_v14  ;;  %vm122_vm4 = vcmp.eq.f32.partialorder %v119_v14, inf  ;;  %v125_v17 = vand.u32 2147483648, %v119_v14  ;;  %vm124_vm5 = vcmp.eq.f32.partialorder %v119_v14, 0.0 }
 0x1c5   :  { %v326_v15 = vpop.eup %325 }
 0x1c6   :  { %v121_v16 = vmul.f32 %v326_v15, %v119_v14 }
 0x1c8   :  { %v123_v18 = vsel %vm122_vm4, %v119_v14, %v121_v16 }
 0x1c9   :  { %v126_v19 = vsel %vm124_vm5, %v125_v17, %v123_v18 }
 0x1ca   :  { %309 = vpush %v126_v19 }
 0x1fb   :  { %s310_s1 = spop %309 }
 0x1fc   :  { %s128_s6 = sadd.f32 1e-12, %s310_s1 }
 0x1fe   :  { %v129_v20 = vstv %s128_s6 }
 0x1ff   :  { %327 = vrcp.f32 %v129_v20 }
 0x209   :  { %v328_v21 = vpop.eup %327 }
 0x20a   :  { %311 = vpush %v328_v21 }
 0x23b   :  { %s312_s7 = spop %311 }
 0x23c   :  { %v132_v22 = vstv %s312_s7 }
 0x23d   :  { %v133_v23 = vmul.f32 %v132_v22, %v103_v3 }
 0x23f   :  { %243 = vst.msk [vmem:[#allocation6] sm:$0x1] %vm108_vm2, %v133_v23  ;;  %305 = vmatmul.mubr.msk.f32.vlgmr.msra.gmra.mrb[0].mxu1 %vm134_vm3, %v133_v23 }
 0x312   :  { %v207_v24 = vpop.f32.mrb[0].mxu1 }
 0x313   :  { %v306_v25 = vpop.f32.mrb[1].mxu1  ;;  %v211_v26 = vmul.f32 %v207_v24, %v207_v24 }
 0x315   :  { %v213_v27 = vsel %vm212_vm6, %v211_v26, 0.0 }
 0x316   :  { %214 = vadd.xlane.f32.xlu0 %v213_v27 }
 0x3a3   :  { %v215_v28 = vpop.xlane.xlu0 %214 }
 0x3a4   :  { %v216_v29 = vrot.slane %v215_v28, 4 }
 0x3a6   :  { %v217_v30 = vadd.f32 %v216_v29, %v215_v28 }
 0x3a8   :  { %v218_v31 = vrot.slane %v217_v30, 2 }
 0x3aa   :  { %v219_v32 = vadd.f32 %v218_v31, %v217_v30 }
 0x3ac   :  { %v220_v33 = vrot.slane %v219_v32, 1 }
 0x3ae   :  { %v221_v34 = vadd.f32 %v220_v33, %v219_v32 }
 0x3b0   :  { %313 = vpush %v221_v34 }
 0x3e1   :  { %s314_s8 = spop %313 }
 0x3e2   :  { %v223_v35 = vstv %s314_s8 }
 0x3e3   :  { %329 = vrsqrt.f32 %v223_v35  ;;  %vm226_vm7 = vcmp.eq.f32.partialorder %v223_v35, inf  ;;  %v229_v38 = vand.u32 2147483648, %v223_v35  ;;  %vm228_vm8 = vcmp.eq.f32.partialorder %v223_v35, 0.0 }
 0x3ed   :  { %v330_v36 = vpop.eup %329 }
 0x3ee   :  { %v225_v37 = vmul.f32 %v330_v36, %v223_v35 }
 0x3f0   :  { %v227_v39 = vsel %vm226_vm7, %v223_v35, %v225_v37 }
 0x3f1   :  { %v230_v40 = vsel %vm228_vm8, %v229_v38, %v227_v39 }
 0x3f2   :  { %315 = vpush %v230_v40 }
 0x423   :  { %s316_s9 = spop %315 }
 0x424   :  { %s232_s10 = sadd.f32 1e-12, %s316_s9 }
 0x426   :  { %v233_v41 = vstv %s232_s10 }
 0x427   :  { %331 = vrcp.f32 %v233_v41 }
 0x431   :  { %v332_v42 = vpop.eup %331 }
 0x432   :  { %317 = vpush %v332_v42 }
 0x463   :  { %s318_s11 = spop %317 }
 0x464   :  { %v236_v43 = vstv %s318_s11 }
 0x465   :  { %v237_v44 = vmul.f32 %v236_v43, %v207_v24 }
 0x467   :  { %242 = vst.msk [vmem:[#allocation5] sm:$0x1] %vm212_vm6, %v237_v44  ;;  %v238_v45 = vmul.f32 %v237_v44, %v207_v24 }
 0x469   :  { %v239_v46 = vsel %vm212_vm6, %v238_v45, 0.0 }
 0x46a   :  { %240 = vadd.xlane.f32.xlu1 %v239_v46 }
 0x46b   :  { %368 = shalt.err (!%p365_p12)
}
 0x46c   :  { %s369_s20 = scalar_lea.hbm %s527_s4, 16 }
 0x46d   :  { %p370_p13 = scmp.ne.s32.totalorder %s527_s4, %s369_s20  ;;  %p373_p0 = scmp.lt.u32.totalorder %s369_s20, %s527_s4 }
 0x46f   :  { %p375_p1 = pnand %p373_p0, %p370_p13 }
 0x471   :  { %378 = shalt.err (!%p375_p1)
}
 0x472   :  { %267 = dma.vmem_to_hbm [thread:$0]  %s265_s13, 16, %s527_s4, [#allocation7]  }
 0x473   :  { %s379_s26 = scalar_lea.vmem %s255_s15, 16  ;;  %s383_s27 = scalar_lea.vmem %s255_s15, 32 }
 0x474   :  { %p380_p2 = scmp.ne.s32.totalorder %s255_s15, %s379_s26  ;;  %p384_p3 = scmp.lt.s32.totalorder %s255_s15, %s255_s15 }
 0x475   :  { %p385_p4 = scmp.lt.s32.totalorder %s383_s27, %s379_s26 }
 0x477   :  { %p386_p5 = por %p385_p4, %p384_p3 }
 0x479   :  { %p387_p6 = pnand %p386_p5, %p380_p2 }
 0x47b   :  { %390 = shalt.err (!%p387_p6)
}
 0x47c   :  { %s391_s30 = scalar_lea.hbm %s526_s3, 16 }
 0x47d   :  { %p392_p7 = scmp.ne.s32.totalorder %s526_s3, %s391_s30  ;;  %p395_p8 = scmp.lt.u32.totalorder %s391_s30, %s526_s3 }
 0x47f   :  { %p397_p9 = pnand %p395_p8, %p392_p7 }
 0x481   :  { %400 = shalt.err (!%p397_p9)
}
 0x482   :  { %257 = dma.vmem_to_hbm [thread:$0]  %s255_s15, 16, %s526_s3, [#allocation4]   ;;  %vm246_vm9 = vcmask 0  }
 0x483   :  { %s434_s9 = smov [#allocation8]  }
 0x484   :  { %s274_s10 = sshll.u32 %s434_s9, 4  ;;  %s275_s10 = int_to_ptr.vmem [resolvable:$true] %s274_s10 }
 0x485   :  { %s401_s11 = scalar_lea.vmem %s275_s10, 16  ;;  %s405_s12 = scalar_lea.vmem %s275_s10, 32 }
 0x486   :  { %p402_p10 = scmp.ne.s32.totalorder %s275_s10, %s401_s11  ;;  %p406_p11 = scmp.lt.s32.totalorder %s275_s10, %s275_s10 }
 0x487   :  { %p407_p12 = scmp.lt.s32.totalorder %s405_s12, %s401_s11 }
 0x489   :  { %p408_p13 = por %p407_p12, %p406_p11 }
 0x48b   :  { %p409_p0 = pnand %p408_p13, %p402_p10 }
 0x4f7   :  { %v241_v47 = vpop.xlane.xlu1 %240 }
 0x4f8   :  { %333 = vrcp.f32 %v241_v47 }
 0x502   :  { %v334_v48 = vpop.eup %333 }
 0x503   :  { %247 = vst.msk [vmem:[#allocation8] sm:$0x1] %vm246_vm9, %v334_v48 }
 0x504   :  { %412 = shalt.err (!%p409_p0)
}
 0x505   :  { %s413_s3 = scalar_lea.hbm %s528_s5, 16 }
 0x506   :  { %p414_p1 = scmp.ne.s32.totalorder %s528_s5, %s413_s3  ;;  %p417_p2 = scmp.lt.u32.totalorder %s413_s3, %s528_s5 }
 0x508   :  { %p419_p3 = pnand %p417_p2, %p414_p1 }
 0x50a   :  { %422 = shalt.err (!%p419_p3)
}
 0x50b   :  { %277 = dma.vmem_to_hbm [thread:$0]  %s275_s10, 16, %s528_s5, [#allocation7]  }
 0x50c   :  { %425 = dma.done.wait [#allocation4], 16  }
 0x50d   :  { %426 = vsyncadd [#allocation4], 4294967280 }
 0x50e   :  { %427 = dma.done.wait [#allocation7], 32  }
 0x50f   :  { %428 = vsyncadd [#allocation7], 4294967264 }
 0x510   :  { %287 = vsyncpa [#allocation3], 1 }
 0x511   :  { %288 = vsyncpa [#allocation4], 1 }
 0x512   :  { %289 = vsyncpa [#allocation7], 1 }

</bundles_post_ra>
